<compile_context>
chip_gen: v7x
topology: tpu7x:2x2x1
jax: 0.10.0
libtpu: 0.0.40
codegen_flags: <defaults>
</compile_context>

<pallas_src>
import functools

import jax
import jax.numpy as jnp
from jax.experimental import pallas as pl
from jax.experimental.pallas import tpu as pltpu


def _hbm_copy_kernel(chunk_rows, x_hbm, o_hbm, sem):
    """One grid step: DMA a disjoint row-chunk HBM -> HBM (no VMEM staging)."""
    i = pl.program_id(0)
    start = pl.multiple_of(i * chunk_rows, chunk_rows)
    cp = pltpu.make_async_copy(
        x_hbm.at[pl.ds(start, chunk_rows), :],
        o_hbm.at[pl.ds(start, chunk_rows), :],
        sem,
    )
    cp.start()
    cp.wait()


def _pick_lanes(total_elems: int):
    """Lane-dense (multiple-of-128) last dim that divides the flat size exactly.

    Returns None when no such width exists — callers fall back to returning
    the input unchanged (never pad + slice).
    """
    for lanes in (4096, 2048, 1024, 512, 256, 128):
        if total_elems % lanes == 0 and total_elems // lanes >= 8:
            return lanes
    for lanes in (512, 256, 128):
        if total_elems % lanes == 0:
            return lanes
    return None


def _sublane_pack(dtype) -> int:
    """Rows per packed sublane group: 8 for 4-byte, 16 for 2-byte, 32 for 1-byte."""
    itemsize = jnp.dtype(dtype).itemsize
    return max(8, 32 // max(1, itemsize))


def _pick_num_chunks(rows: int, pack: int) -> int:
    """Most chunks in {8,4,2,1} with rows % n == 0 and sublane-aligned chunks."""
    for n in (8, 4, 2):
        if rows % n == 0 and (rows // n) % pack == 0:
            return n
    return 1


def hq_model_forward(
    batch_data: jax.Array,
    *,
    donate_input: bool = False,
    min_kernel_bytes: int = 1 << 20,
) -> jax.Array:
    """Pallas equivalent of HQModel.forward (abstract -> identity)."""
    orig_shape = batch_data.shape
    orig_dtype = batch_data.dtype
    total = int(batch_data.size)
    itemsize = jnp.dtype(orig_dtype).itemsize
    nbytes = total * itemsize

    # Identity semantics: when the caller donates the buffer there is nothing
    # to copy at all; likewise for empty / small tensors the fixed pallas_call
    # launch + DMA overhead dominates, so skip the kernel entirely.
    if donate_input or total == 0 or nbytes < min_kernel_bytes:
        return batch_data

    lanes = _pick_lanes(total)
    if lanes is None:
        # Cannot view lane-dense without padding; padding would cost ~3x the
        # traffic of the copy itself, so just return the input (exact identity).
        return batch_data

    rows = total // lanes
    pack = _sublane_pack(orig_dtype)
    n_chunks = _pick_num_chunks(rows, pack)
    chunk_rows = rows // n_chunks

    x2d = batch_data.reshape(rows, lanes)  # free view, no HBM traffic

    out2d = pl.pallas_call(
        functools.partial(_hbm_copy_kernel, chunk_rows),
        out_shape=jax.ShapeDtypeStruct((rows, lanes), orig_dtype),
        grid=(n_chunks,),
        # Raw HBM refs on both sides: no VMEM double-buffers, no vld/vst.
        in_specs=[pl.BlockSpec(memory_space=pl.ANY)],
        out_specs=pl.BlockSpec(memory_space=pl.ANY),
        scratch_shapes=[pltpu.SemaphoreType.DMA],
        compiler_params=pltpu.CompilerParams(
            # "parallel" lets v7x shard the (>=2-step) chunk axis over its two
            # TensorCores so both DMA queues issue; harmless on v5e/v6e.
            dimension_semantics=("parallel",),
        ),
        cost_estimate=pl.CostEstimate(
            flops=0, transcendentals=0, bytes_accessed=2 * nbytes
        ),
    )(x2d)

    return out2d.reshape(orig_shape)


class HQModelPallas:
    """Mirror of the PyTorch HQModel base class (no parameters)."""

    def __init__(self, class_id2names=None, **kwargs):
        self.class_id2names = class_id2names
        # __init__ registers no parameters -> nothing to initialize.

    def get_class_names(self):
        return self.class_id2names

    def forward(self, batch_data, **kwargs):
        # Abstract in PyTorch; here: identity pass-through (Pallas HBM->HBM DMA
        # copy only when the tensor is large enough to be worth a kernel).
        return hq_model_forward(batch_data, **kwargs)

    def __call__(self, batch_data, **kwargs):
        return self.forward(batch_data, **kwargs)


if __name__ == "__main__":
    key = jax.random.PRNGKey(0)
    # Small NCHW batch consistent with a detector input: B=2, C=4, H=W=16.
    x = jax.random.normal(key, (2, 4, 16, 16), dtype=jnp.float32)

    model = HQModelPallas(class_id2names={0: "object"})

    # Default path: 8 KiB tensor is below the kernel threshold -> zero-cost
    # short-circuit (the highest-value optimization for the identity forward).
    y_fast = jax.block_until_ready(model(x))
    assert y_fast.shape == x.shape and y_fast.dtype == x.dtype
    assert bool(jnp.array_equal(y_fast, x))

    # Force the Pallas HBM->HBM DMA path once to exercise the kernel itself.
    y_kernel = jax.block_until_ready(model(x, min_kernel_bytes=0))
    assert y_kernel.shape == x.shape and y_kernel.dtype == x.dtype
    assert bool(jnp.array_equal(y_kernel, x))

    print("KERNEL_OK")
</pallas_src>

<mosaic_0001>
module attributes {stable_mosaic.version = 11 : i64} {
  func.func @_hbm_copy_kernel(%arg0: i32, %arg1: memref<8x256xf32, #tpu.memory_space<any>>, %arg2: memref<8x256xf32, #tpu.memory_space<any>>, %arg3: memref<!tpu.dma_semaphore, #tpu.memory_space<semaphore_mem>>) attributes {dimension_semantics = [#tpu.dimension_semantics<parallel>], iteration_bounds = array<i64: 1>, scalar_prefetch = 0 : i64, scratch_operands = 1 : i64, tpu.core_type = #tpu.core_type<tc>, window_params = [{}, {}]} {
    %c8_i32 = arith.constant 8 : i32
    %0 = arith.muli %arg0, %c8_i32 : i32
    %1 = tpu.assume_multiple %0, 8 : i32
    %c0_i32 = arith.constant 0 : i32
    %2 = tpu.memref_slice %arg1[%1, %c0_i32] : memref<8x256xf32, #tpu.memory_space<any>> -> memref<8x256xf32, #tpu.memory_space<any>>
    %c0_i32_0 = arith.constant 0 : i32
    %3 = tpu.memref_slice %arg2[%1, %c0_i32_0] : memref<8x256xf32, #tpu.memory_space<any>> -> memref<8x256xf32, #tpu.memory_space<any>>
    tpu.enqueue_dma source(%2 : memref<8x256xf32, #tpu.memory_space<any>>) target(%3 : memref<8x256xf32, #tpu.memory_space<any>>) target_semaphore(%arg3 : memref<!tpu.dma_semaphore, #tpu.memory_space<semaphore_mem>>)
    %c0_i32_1 = arith.constant 0 : i32
    %4 = tpu.memref_slice %arg1[%1, %c0_i32_1] : memref<8x256xf32, #tpu.memory_space<any>> -> memref<8x256xf32, #tpu.memory_space<any>>
    %c0_i32_2 = arith.constant 0 : i32
    %5 = tpu.memref_slice %arg2[%1, %c0_i32_2] : memref<8x256xf32, #tpu.memory_space<any>> -> memref<8x256xf32, #tpu.memory_space<any>>
    tpu.wait_dma2 semaphore(%arg3 : memref<!tpu.dma_semaphore, #tpu.memory_space<semaphore_mem>>) src(%4 : memref<8x256xf32, #tpu.memory_space<any>>) dst(%5 : memref<8x256xf32, #tpu.memory_space<any>>)
    return
  }
}

</mosaic_0001>

<bundles_post_ra>
// kernel: tpu_custom_call.1
= control target key start
LH: loop header
LB: loop body
LE: loop exit
PB: predicated region body
PF: predicated region fallthrough
CT: control target
= control target key end

     0   :  { %s47_s6 = smov [#allocation2]   ;;  %s48_s7 = smov [#allocation3]   ;;  %s66_s0 = inlined_call_operand.hbm [shape: f32[8,256], index: 0, kind: input, shape index: {}]   ;;  %s67_s1 = inlined_call_operand.hbm [shape: f32[8,256], index: 1, kind: output, shape index: {}]  }
   0x1   :  { %s49_s8 = smov 0  }
   0x2   :  { %26 = dma.general %s66_s0, 256, %s67_s1, %s47_s6, %s48_s7, [#allocation4], %s49_s8, 0  }
   0x3   :  { %45 = dma.done.wait [#allocation2], 256 }
   0x4   :  { %46 = vsyncadd [#allocation2], 4294967040 }
   0x5   :  { %31 = vsyncmov [#allocation2] }
   0x8   :  { %s32_s13 = vpop.sfrf %31 }
   0x9   :  { %p41_p0 = scmp.ne.s32.totalorder %s32_s13, 0 }
   0xb   :  { %36 = shalt.err (%p41_p0)  }

</bundles_post_ra>
